<compile_context>
chip_gen: v5e
topology: v5e:2x2
jax: 0.10.0
libtpu: 0.0.40
codegen_flags: <defaults>
</compile_context>

<pallas_src>
import functools

import jax
import jax.numpy as jnp
from jax.experimental import pallas as pl
from jax.experimental.pallas import tpu as pltpu


def mlp_kernel(x_ref, w1_ref, b1_ref, w2_ref, b2_ref, o_ref):
    x = x_ref[...]            # (TB, F)
    w1 = w1_ref[...]          # (F, H)
    w2 = w2_ref[...]          # (H, C)
    batch = x.shape[0]
    num_feat = w1.shape[0]
    hidden = w2.shape[0]
    num_classes = w2.shape[1]

    # ---- lin1: K = F is tiny -> F broadcast multiply-adds on the VPU (skip MXU) ----
    h = jnp.broadcast_to(b1_ref[...], (batch, hidden))
    for k in range(num_feat):
        h = h + x[:, k:k + 1] * w1[k:k + 1, :]

    # ---- sigmoid: exp on the EUP, divide via reciprocal ----
    # (pl.reciprocal(..., approx=True) would use the EUP vrcp slot at reduced
    #  precision; exact form kept so the 1e-5 check against the reference holds.)
    h = pl.reciprocal(1.0 + jnp.exp(-h))

    # ---- lin2: K = H, N = C are tiny -> H broadcast multiply-adds on the VPU ----
    logits = jnp.broadcast_to(b2_ref[...], (batch, num_classes))
    for k in range(hidden):
        logits = logits + h[:, k:k + 1] * w2[k:k + 1, :]

    # ---- log_softmax over dim=1 (true class lanes only; no padding, no mask) ----
    m = jnp.max(logits, axis=1, keepdims=True)
    shifted = logits - m
    lse = jnp.log(jnp.sum(jnp.exp(shifted), axis=1, keepdims=True))
    o_ref[...] = (shifted - lse).astype(o_ref.dtype)


def prepare_params(w1, b1, w2, b2):
    """One-time parameter packing at init (NOT on the per-call path)."""
    return (
        jnp.asarray(w1, jnp.float32),                  # (F, H)
        jnp.asarray(b1, jnp.float32).reshape(1, -1),   # (1, H)
        jnp.asarray(w2, jnp.float32),                  # (H, C)
        jnp.asarray(b2, jnp.float32).reshape(1, -1),   # (1, C)
    )


@functools.partial(jax.jit, static_argnames=("batch_tile",))
def multiclass_net_forward(x, w1, b1, w2, b2, *, batch_tile=512):
    """x: (B, F) f32; w1: (F, H); b1: (1, H); w2: (H, C); b2: (1, C) -> (B, C) log-probs."""
    B, F = x.shape
    H = w1.shape[1]
    C = w2.shape[1]

    # Single full-array block at small batch; tile + shard across TCs at scale.
    tb = B if B <= batch_tile else batch_tile
    nb = pl.cdiv(B, tb)

    cost = pl.CostEstimate(
        flops=2 * B * (F * H + H * C),
        transcendentals=B * (H + C),
        bytes_accessed=4 * (B * F + F * H + H + H * C + C + B * C),
    )

    return pl.pallas_call(
        mlp_kernel,
        out_shape=jax.ShapeDtypeStruct((B, C), jnp.float32),
        grid=(nb,),
        in_specs=[
            pl.BlockSpec((tb, F), lambda i: (i, 0)),   # activations: tiled on batch
            pl.BlockSpec((F, H), lambda i: (0, 0)),    # weights stay VMEM-resident
            pl.BlockSpec((1, H), lambda i: (0, 0)),
            pl.BlockSpec((H, C), lambda i: (0, 0)),
            pl.BlockSpec((1, C), lambda i: (0, 0)),
        ],
        out_specs=pl.BlockSpec((tb, C), lambda i: (i, 0)),
        compiler_params=pltpu.CompilerParams(dimension_semantics=("parallel",)),
        cost_estimate=cost,
    )(x, w1, b1, w2, b2)


def reference_forward(x, w1, b1, w2, b2):
    h = 1.0 / (1.0 + jnp.exp(-(x @ w1 + b1)))
    logits = h @ w2 + b2
    return jax.nn.log_softmax(logits, axis=1)


if __name__ == "__main__":
    # Iris-like problem sizes.
    NUM_FEATURES = 4
    NUM_CLASSES = 3
    HIDDEN_FEATURES = 16
    BATCH = 8

    key = jax.random.PRNGKey(0)
    kx, k1, k2, k3, k4 = jax.random.split(key, 5)

    x = jax.random.normal(kx, (BATCH, NUM_FEATURES), dtype=jnp.float32)
    # Deterministic parameter init (uniform, similar in spirit to nn.Linear).
    w1 = jax.random.uniform(k1, (NUM_FEATURES, HIDDEN_FEATURES),
                            minval=-0.5, maxval=0.5, dtype=jnp.float32)
    b1 = jax.random.uniform(k2, (HIDDEN_FEATURES,),
                            minval=-0.5, maxval=0.5, dtype=jnp.float32)
    w2 = jax.random.uniform(k3, (HIDDEN_FEATURES, NUM_CLASSES),
                            minval=-0.5, maxval=0.5, dtype=jnp.float32)
    b2 = jax.random.uniform(k4, (NUM_CLASSES,),
                            minval=-0.5, maxval=0.5, dtype=jnp.float32)

    # One-time packing at "init"; the hot path below does zero preprocessing.
    w1p, b1p, w2p, b2p = prepare_params(w1, b1, w2, b2)

    out = multiclass_net_forward(x, w1p, b1p, w2p, b2p)
    out = jax.block_until_ready(out)

    ref = reference_forward(x, w1, b1, w2, b2)
    assert out.shape == (BATCH, NUM_CLASSES)
    assert jnp.allclose(out, ref, atol=1e-5, rtol=1e-5), "mismatch vs reference"

    print("KERNEL_OK")
</pallas_src>

<mosaic_0001>
module attributes {stable_mosaic.version = 11 : i64} {
  func.func @mlp_kernel(%arg0: i32, %arg1: memref<8x4xf32, #tpu.memory_space<vmem>>, %arg2: memref<4x16xf32, #tpu.memory_space<vmem>>, %arg3: memref<1x16xf32, #tpu.memory_space<vmem>>, %arg4: memref<16x3xf32, #tpu.memory_space<vmem>>, %arg5: memref<1x3xf32, #tpu.memory_space<vmem>>, %arg6: memref<8x3xf32, #tpu.memory_space<vmem>>) attributes {dimension_semantics = [#tpu.dimension_semantics<parallel>], iteration_bounds = array<i64: 1>, scalar_prefetch = 0 : i64, scratch_operands = 0 : i64, tpu.core_type = #tpu.core_type<tc>, window_params = [{transform_indices = @transform_0, window_bounds = array<i64: 8, 4>}, {pipeline_mode = #tpu.pipeline_mode<synchronous>, transform_indices = @transform_1, window_bounds = array<i64: 4, 16>}, {pipeline_mode = #tpu.pipeline_mode<synchronous>, transform_indices = @transform_2, window_bounds = array<i64: 1, 16>}, {pipeline_mode = #tpu.pipeline_mode<synchronous>, transform_indices = @transform_3, window_bounds = array<i64: 16, 3>}, {pipeline_mode = #tpu.pipeline_mode<synchronous>, transform_indices = @transform_4, window_bounds = array<i64: 1, 3>}, {transform_indices = @transform_5, window_bounds = array<i64: 8, 3>}]} {
    %c0 = arith.constant 0 : index
    %c0_0 = arith.constant 0 : index
    %0 = vector.load %arg1[%c0, %c0_0] : memref<8x4xf32, #tpu.memory_space<vmem>>, vector<8x4xf32>
    %c0_1 = arith.constant 0 : index
    %c0_2 = arith.constant 0 : index
    %1 = vector.load %arg2[%c0_1, %c0_2] : memref<4x16xf32, #tpu.memory_space<vmem>>, vector<4x16xf32>
    %c0_3 = arith.constant 0 : index
    %c0_4 = arith.constant 0 : index
    %2 = vector.load %arg4[%c0_3, %c0_4] : memref<16x3xf32, #tpu.memory_space<vmem>>, vector<16x3xf32>
    %c0_5 = arith.constant 0 : index
    %c0_6 = arith.constant 0 : index
    %3 = vector.load %arg3[%c0_5, %c0_6] : memref<1x16xf32, #tpu.memory_space<vmem>>, vector<1x16xf32>
    %4 = vector.shape_cast %3 : vector<1x16xf32> to vector<1x16xf32>
    %5 = vector.broadcast %4 : vector<1x16xf32> to vector<8x16xf32>
    %6 = vector.extract_strided_slice %0 {offsets = [0, 0], sizes = [8, 1], strides = [1, 1]} : vector<8x4xf32> to vector<8x1xf32>
    %7 = vector.extract_strided_slice %1 {offsets = [0, 0], sizes = [1, 16], strides = [1, 1]} : vector<4x16xf32> to vector<1x16xf32>
    %8 = vector.broadcast %6 : vector<8x1xf32> to vector<8x16xf32>
    %9 = vector.broadcast %7 : vector<1x16xf32> to vector<8x16xf32>
    %10 = arith.mulf %8, %9 : vector<8x16xf32>
    %11 = arith.addf %5, %10 : vector<8x16xf32>
    %12 = vector.extract_strided_slice %0 {offsets = [0, 1], sizes = [8, 1], strides = [1, 1]} : vector<8x4xf32> to vector<8x1xf32>
    %13 = vector.extract_strided_slice %1 {offsets = [1, 0], sizes = [1, 16], strides = [1, 1]} : vector<4x16xf32> to vector<1x16xf32>
    %14 = vector.broadcast %12 : vector<8x1xf32> to vector<8x16xf32>
    %15 = vector.broadcast %13 : vector<1x16xf32> to vector<8x16xf32>
    %16 = arith.mulf %14, %15 : vector<8x16xf32>
    %17 = arith.addf %11, %16 : vector<8x16xf32>
    %18 = vector.extract_strided_slice %0 {offsets = [0, 2], sizes = [8, 1], strides = [1, 1]} : vector<8x4xf32> to vector<8x1xf32>
    %19 = vector.extract_strided_slice %1 {offsets = [2, 0], sizes = [1, 16], strides = [1, 1]} : vector<4x16xf32> to vector<1x16xf32>
    %20 = vector.broadcast %18 : vector<8x1xf32> to vector<8x16xf32>
    %21 = vector.broadcast %19 : vector<1x16xf32> to vector<8x16xf32>
    %22 = arith.mulf %20, %21 : vector<8x16xf32>
    %23 = arith.addf %17, %22 : vector<8x16xf32>
    %24 = vector.extract_strided_slice %0 {offsets = [0, 3], sizes = [8, 1], strides = [1, 1]} : vector<8x4xf32> to vector<8x1xf32>
    %25 = vector.extract_strided_slice %1 {offsets = [3, 0], sizes = [1, 16], strides = [1, 1]} : vector<4x16xf32> to vector<1x16xf32>
    %26 = vector.broadcast %24 : vector<8x1xf32> to vector<8x16xf32>
    %27 = vector.broadcast %25 : vector<1x16xf32> to vector<8x16xf32>
    %28 = arith.mulf %26, %27 : vector<8x16xf32>
    %29 = arith.addf %23, %28 : vector<8x16xf32>
    %cst = arith.constant 0.000000e+00 : f32
    %30 = vector.broadcast %cst : f32 to vector<8x16xf32>
    %31 = arith.subf %30, %29 : vector<8x16xf32>
    %32 = math.exp %31 : vector<8x16xf32>
    %cst_7 = arith.constant 1.000000e+00 : f32
    %33 = vector.broadcast %cst_7 : f32 to vector<8x16xf32>
    %34 = arith.addf %33, %32 : vector<8x16xf32>
    %35 = tpu.reciprocal %34 : vector<8x16xf32> -> vector<8x16xf32>
    %c0_8 = arith.constant 0 : index
    %c0_9 = arith.constant 0 : index
    %36 = vector.load %arg5[%c0_8, %c0_9] : memref<1x3xf32, #tpu.memory_space<vmem>>, vector<1x3xf32>
    %37 = vector.shape_cast %36 : vector<1x3xf32> to vector<1x3xf32>
    %38 = vector.broadcast %37 : vector<1x3xf32> to vector<8x3xf32>
    %39 = vector.extract_strided_slice %35 {offsets = [0, 0], sizes = [8, 1], strides = [1, 1]} : vector<8x16xf32> to vector<8x1xf32>
    %40 = vector.extract_strided_slice %2 {offsets = [0, 0], sizes = [1, 3], strides = [1, 1]} : vector<16x3xf32> to vector<1x3xf32>
    %41 = vector.broadcast %39 : vector<8x1xf32> to vector<8x3xf32>
    %42 = vector.broadcast %40 : vector<1x3xf32> to vector<8x3xf32>
    %43 = arith.mulf %41, %42 : vector<8x3xf32>
    %44 = arith.addf %38, %43 : vector<8x3xf32>
    %45 = vector.extract_strided_slice %35 {offsets = [0, 1], sizes = [8, 1], strides = [1, 1]} : vector<8x16xf32> to vector<8x1xf32>
    %46 = vector.extract_strided_slice %2 {offsets = [1, 0], sizes = [1, 3], strides = [1, 1]} : vector<16x3xf32> to vector<1x3xf32>
    %47 = vector.broadcast %45 : vector<8x1xf32> to vector<8x3xf32>
    %48 = vector.broadcast %46 : vector<1x3xf32> to vector<8x3xf32>
    %49 = arith.mulf %47, %48 : vector<8x3xf32>
    %50 = arith.addf %44, %49 : vector<8x3xf32>
    %51 = vector.extract_strided_slice %35 {offsets = [0, 2], sizes = [8, 1], strides = [1, 1]} : vector<8x16xf32> to vector<8x1xf32>
    %52 = vector.extract_strided_slice %2 {offsets = [2, 0], sizes = [1, 3], strides = [1, 1]} : vector<16x3xf32> to vector<1x3xf32>
    %53 = vector.broadcast %51 : vector<8x1xf32> to vector<8x3xf32>
    %54 = vector.broadcast %52 : vector<1x3xf32> to vector<8x3xf32>
    %55 = arith.mulf %53, %54 : vector<8x3xf32>
    %56 = arith.addf %50, %55 : vector<8x3xf32>
    %57 = vector.extract_strided_slice %35 {offsets = [0, 3], sizes = [8, 1], strides = [1, 1]} : vector<8x16xf32> to vector<8x1xf32>
    %58 = vector.extract_strided_slice %2 {offsets = [3, 0], sizes = [1, 3], strides = [1, 1]} : vector<16x3xf32> to vector<1x3xf32>
    %59 = vector.broadcast %57 : vector<8x1xf32> to vector<8x3xf32>
    %60 = vector.broadcast %58 : vector<1x3xf32> to vector<8x3xf32>
    %61 = arith.mulf %59, %60 : vector<8x3xf32>
    %62 = arith.addf %56, %61 : vector<8x3xf32>
    %63 = vector.extract_strided_slice %35 {offsets = [0, 4], sizes = [8, 1], strides = [1, 1]} : vector<8x16xf32> to vector<8x1xf32>
    %64 = vector.extract_strided_slice %2 {offsets = [4, 0], sizes = [1, 3], strides = [1, 1]} : vector<16x3xf32> to vector<1x3xf32>
    %65 = vector.broadcast %63 : vector<8x1xf32> to vector<8x3xf32>
    %66 = vector.broadcast %64 : vector<1x3xf32> to vector<8x3xf32>
    %67 = arith.mulf %65, %66 : vector<8x3xf32>
    %68 = arith.addf %62, %67 : vector<8x3xf32>
    %69 = vector.extract_strided_slice %35 {offsets = [0, 5], sizes = [8, 1], strides = [1, 1]} : vector<8x16xf32> to vector<8x1xf32>
    %70 = vector.extract_strided_slice %2 {offsets = [5, 0], sizes = [1, 3], strides = [1, 1]} : vector<16x3xf32> to vector<1x3xf32>
    %71 = vector.broadcast %69 : vector<8x1xf32> to vector<8x3xf32>
    %72 = vector.broadcast %70 : vector<1x3xf32> to vector<8x3xf32>
    %73 = arith.mulf %71, %72 : vector<8x3xf32>
    %74 = arith.addf %68, %73 : vector<8x3xf32>
    %75 = vector.extract_strided_slice %35 {offsets = [0, 6], sizes = [8, 1], strides = [1, 1]} : vector<8x16xf32> to vector<8x1xf32>
    %76 = vector.extract_strided_slice %2 {offsets = [6, 0], sizes = [1, 3], strides = [1, 1]} : vector<16x3xf32> to vector<1x3xf32>
    %77 = vector.broadcast %75 : vector<8x1xf32> to vector<8x3xf32>
    %78 = vector.broadcast %76 : vector<1x3xf32> to vector<8x3xf32>
    %79 = arith.mulf %77, %78 : vector<8x3xf32>
    %80 = arith.addf %74, %79 : vector<8x3xf32>
    %81 = vector.extract_strided_slice %35 {offsets = [0, 7], sizes = [8, 1], strides = [1, 1]} : vector<8x16xf32> to vector<8x1xf32>
    %82 = vector.extract_strided_slice %2 {offsets = [7, 0], sizes = [1, 3], strides = [1, 1]} : vector<16x3xf32> to vector<1x3xf32>
    %83 = vector.broadcast %81 : vector<8x1xf32> to vector<8x3xf32>
    %84 = vector.broadcast %82 : vector<1x3xf32> to vector<8x3xf32>
    %85 = arith.mulf %83, %84 : vector<8x3xf32>
    %86 = arith.addf %80, %85 : vector<8x3xf32>
    %87 = vector.extract_strided_slice %35 {offsets = [0, 8], sizes = [8, 1], strides = [1, 1]} : vector<8x16xf32> to vector<8x1xf32>
    %88 = vector.extract_strided_slice %2 {offsets = [8, 0], sizes = [1, 3], strides = [1, 1]} : vector<16x3xf32> to vector<1x3xf32>
    %89 = vector.broadcast %87 : vector<8x1xf32> to vector<8x3xf32>
    %90 = vector.broadcast %88 : vector<1x3xf32> to vector<8x3xf32>
    %91 = arith.mulf %89, %90 : vector<8x3xf32>
    %92 = arith.addf %86, %91 : vector<8x3xf32>
    %93 = vector.extract_strided_slice %35 {offsets = [0, 9], sizes = [8, 1], strides = [1, 1]} : vector<8x16xf32> to vector<8x1xf32>
    %94 = vector.extract_strided_slice %2 {offsets = [9, 0], sizes = [1, 3], strides = [1, 1]} : vector<16x3xf32> to vector<1x3xf32>
    %95 = vector.broadcast %93 : vector<8x1xf32> to vector<8x3xf32>
    %96 = vector.broadcast %94 : vector<1x3xf32> to vector<8x3xf32>
    %97 = arith.mulf %95, %96 : vector<8x3xf32>
    %98 = arith.addf %92, %97 : vector<8x3xf32>
    %99 = vector.extract_strided_slice %35 {offsets = [0, 10], sizes = [8, 1], strides = [1, 1]} : vector<8x16xf32> to vector<8x1xf32>
    %100 = vector.extract_strided_slice %2 {offsets = [10, 0], sizes = [1, 3], strides = [1, 1]} : vector<16x3xf32> to vector<1x3xf32>
    %101 = vector.broadcast %99 : vector<8x1xf32> to vector<8x3xf32>
    %102 = vector.broadcast %100 : vector<1x3xf32> to vector<8x3xf32>
    %103 = arith.mulf %101, %102 : vector<8x3xf32>
    %104 = arith.addf %98, %103 : vector<8x3xf32>
    %105 = vector.extract_strided_slice %35 {offsets = [0, 11], sizes = [8, 1], strides = [1, 1]} : vector<8x16xf32> to vector<8x1xf32>
    %106 = vector.extract_strided_slice %2 {offsets = [11, 0], sizes = [1, 3], strides = [1, 1]} : vector<16x3xf32> to vector<1x3xf32>
    %107 = vector.broadcast %105 : vector<8x1xf32> to vector<8x3xf32>
    %108 = vector.broadcast %106 : vector<1x3xf32> to vector<8x3xf32>
    %109 = arith.mulf %107, %108 : vector<8x3xf32>
    %110 = arith.addf %104, %109 : vector<8x3xf32>
    %111 = vector.extract_strided_slice %35 {offsets = [0, 12], sizes = [8, 1], strides = [1, 1]} : vector<8x16xf32> to vector<8x1xf32>
    %112 = vector.extract_strided_slice %2 {offsets = [12, 0], sizes = [1, 3], strides = [1, 1]} : vector<16x3xf32> to vector<1x3xf32>
    %113 = vector.broadcast %111 : vector<8x1xf32> to vector<8x3xf32>
    %114 = vector.broadcast %112 : vector<1x3xf32> to vector<8x3xf32>
    %115 = arith.mulf %113, %114 : vector<8x3xf32>
    %116 = arith.addf %110, %115 : vector<8x3xf32>
    %117 = vector.extract_strided_slice %35 {offsets = [0, 13], sizes = [8, 1], strides = [1, 1]} : vector<8x16xf32> to vector<8x1xf32>
    %118 = vector.extract_strided_slice %2 {offsets = [13, 0], sizes = [1, 3], strides = [1, 1]} : vector<16x3xf32> to vector<1x3xf32>
    %119 = vector.broadcast %117 : vector<8x1xf32> to vector<8x3xf32>
    %120 = vector.broadcast %118 : vector<1x3xf32> to vector<8x3xf32>
    %121 = arith.mulf %119, %120 : vector<8x3xf32>
    %122 = arith.addf %116, %121 : vector<8x3xf32>
    %123 = vector.extract_strided_slice %35 {offsets = [0, 14], sizes = [8, 1], strides = [1, 1]} : vector<8x16xf32> to vector<8x1xf32>
    %124 = vector.extract_strided_slice %2 {offsets = [14, 0], sizes = [1, 3], strides = [1, 1]} : vector<16x3xf32> to vector<1x3xf32>
    %125 = vector.broadcast %123 : vector<8x1xf32> to vector<8x3xf32>
    %126 = vector.broadcast %124 : vector<1x3xf32> to vector<8x3xf32>
    %127 = arith.mulf %125, %126 : vector<8x3xf32>
    %128 = arith.addf %122, %127 : vector<8x3xf32>
    %129 = vector.extract_strided_slice %35 {offsets = [0, 15], sizes = [8, 1], strides = [1, 1]} : vector<8x16xf32> to vector<8x1xf32>
    %130 = vector.extract_strided_slice %2 {offsets = [15, 0], sizes = [1, 3], strides = [1, 1]} : vector<16x3xf32> to vector<1x3xf32>
    %131 = vector.broadcast %129 : vector<8x1xf32> to vector<8x3xf32>
    %132 = vector.broadcast %130 : vector<1x3xf32> to vector<8x3xf32>
    %133 = arith.mulf %131, %132 : vector<8x3xf32>
    %134 = arith.addf %128, %133 : vector<8x3xf32>
    %cst_10 = arith.constant dense<0xFF800000> : vector<8xf32>
    %135 = vector.multi_reduction <maximumf>, %134, %cst_10 [1] : vector<8x3xf32> to vector<8xf32>
    %136 = vector.shape_cast %135 : vector<8xf32> to vector<8x1xf32>
    %137 = vector.broadcast %136 : vector<8x1xf32> to vector<8x3xf32>
    %138 = arith.subf %134, %137 : vector<8x3xf32>
    %139 = math.exp %138 : vector<8x3xf32>
    %cst_11 = arith.constant dense<0.000000e+00> : vector<8xf32>
    %140 = vector.multi_reduction <add>, %139, %cst_11 [1] : vector<8x3xf32> to vector<8xf32>
    %141 = vector.shape_cast %140 : vector<8xf32> to vector<8x1xf32>
    %142 = math.log %141 : vector<8x1xf32>
    %143 = vector.broadcast %142 : vector<8x1xf32> to vector<8x3xf32>
    %144 = arith.subf %138, %143 : vector<8x3xf32>
    %c0_12 = arith.constant 0 : index
    %c0_13 = arith.constant 0 : index
    %145 = vector.load %arg6[%c0_12, %c0_13] : memref<8x3xf32, #tpu.memory_space<vmem>>, vector<8x3xf32>
    tpu.vector_store %arg6[%c0_12, %c0_13], %144 {strides = array<i32>} : memref<8x3xf32, #tpu.memory_space<vmem>>, vector<8x3xf32>,
    return
  }
  func.func @transform_0(%arg0: i32) -> (i32, i32) {
    %c0_i32 = arith.constant 0 : i32
    %c0_i32_0 = arith.constant 0 : i32
    return %arg0, %c0_i32 : i32, i32
  }
  func.func @transform_1(%arg0: i32) -> (i32, i32) {
    %c0_i32 = arith.constant 0 : i32
    %c0_i32_0 = arith.constant 0 : i32
    %c0_i32_1 = arith.constant 0 : i32
    return %c0_i32, %c0_i32_0 : i32, i32
  }
  func.func @transform_2(%arg0: i32) -> (i32, i32) {
    %c0_i32 = arith.constant 0 : i32
    %c0_i32_0 = arith.constant 0 : i32
    %c0_i32_1 = arith.constant 0 : i32
    return %c0_i32, %c0_i32_0 : i32, i32
  }
  func.func @transform_3(%arg0: i32) -> (i32, i32) {
    %c0_i32 = arith.constant 0 : i32
    %c0_i32_0 = arith.constant 0 : i32
    %c0_i32_1 = arith.constant 0 : i32
    return %c0_i32, %c0_i32_0 : i32, i32
  }
  func.func @transform_4(%arg0: i32) -> (i32, i32) {
    %c0_i32 = arith.constant 0 : i32
    %c0_i32_0 = arith.constant 0 : i32
    %c0_i32_1 = arith.constant 0 : i32
    return %c0_i32, %c0_i32_0 : i32, i32
  }
  func.func @transform_5(%arg0: i32) -> (i32, i32) {
    %c0_i32 = arith.constant 0 : i32
    %c0_i32_0 = arith.constant 0 : i32
    return %arg0, %c0_i32 : i32, i32
  }
}

</mosaic_0001>

<bundles_post_ra>
// kernel: multiclass_net_forward.1
= control target key start
LH: loop header
LB: loop body
LE: loop exit
PB: predicated region body
PF: predicated region fallthrough
CT: control target
= control target key end

     0   :  { %v257_v0 = vmov 0   ;;  %v258_v2 = vmov 2   ;;  %v259_v3 = vmov 1   ;;  %v260_v4 = vmov 3   ;;  %s327_s0 = inlined_call_operand.vmem [shape: f32[8,4], index: 0, kind: input, shape index: {}]   ;;  %s328_s2 = inlined_call_operand.vmem [shape: f32[1,16], index: 2, kind: input, shape index: {}]   ;;  %s329_s4 = inlined_call_operand.vmem [shape: f32[1,3], index: 4, kind: input, shape index: {}]   ;;  %s330_s1 = inlined_call_operand.vmem [shape: f32[4,16], index: 1, kind: input, shape index: {}]   ;;  %s331_s3 = inlined_call_operand.vmem [shape: f32[16,3], index: 3, kind: input, shape index: {}]   ;;  %s332_s5 = inlined_call_operand.vmem [shape: f32[8,3], index: 5, kind: output, shape index: {}]  }
   0x1   :  { %226 = vset.pattern.permute.xlu0 %v257_v0  ;;  %v20_v1 = vld [vmem:[%s327_s0] sm:$0xff]  ;;  %228 = vset.pattern.permute.xlu1 %v258_v2  ;;  %v261_v22 = vmov 4   ;;  %v262_v38 = vmov 9   ;;  %v263_v39 = vmov 5   ;;  %v264_v40 = vmov 14  }
   0x2   :  { %30 = vperm.xlu0 %226, %v20_v1   ;;  %44 = vperm.xlu1 %228, %v20_v1   ;;  %v21_v5 = vld [vmem:[%s330_s1] sm:$0xf]  ;;  %v265_v41 = vmov 7   ;;  %v266_v42 = vmov 10   ;;  %v267_v43 = vmov 15   ;;  %v268_v44 = vmov 6  }
   0x3   :  { %230 = vset.pattern.permute.xlu2 %v257_v0  ;;  %v33_v8 = vperm.slane %v21_v5, 0  ;;  %v247_v9 = vld [vmem:[%s328_s2] ss:$0 sm:$0xff]  ;;  %v40_v11 = vperm.slane %v21_v5, 1  ;;  %v47_v12 = vperm.slane %v21_v5, 2  ;;  %v54_v13 = vperm.slane %v21_v5, 3 }
   0x4   :  { %v269_v45 = vmov 12   ;;  %v270_v46 = vmov 8   ;;  %v271_v47 = vmov 11   ;;  %v272_v48 = vmov 13   ;;  %v22_v51 = vld [vmem:[%s331_s3] sm:$0xff] }
   0x5   :  { %v84_v52 = vperm.slane %v22_v51, 0  ;;  %v91_v53 = vperm.slane %v22_v51, 1  ;;  %v248_v55 = vld [vmem:[%s329_s4] ss:$0 sm:$0xff]  ;;  %v98_v57 = vperm.slane %v22_v51, 2  ;;  %v105_v63 = vperm.slane %v22_v51, 3 }
   0x6   :  { %vm192_vm4 = vcmask 23552  }
   0xa   :  { %227 = vset.pattern.permute.xlu0 %v259_v3  ;;  %229 = vset.pattern.permute.xlu1 %v260_v4 }
   0xb   :  { %37 = vperm.xlu0 %227, %v20_v1   ;;  %51 = vperm.xlu1 %229, %v20_v1  }
  0x13   :  { %232 = vset.pattern.permute.xlu1 %v258_v2  ;;  %234 = vset.pattern.permute.xlu0 %v261_v22 }
  0x74   :  { %v31_v6 = vpop.permute.xlu0 %30  ;;  %v45_v7 = vpop.permute.xlu1 %44 }
  0x75   :  { %v34_v10 = vmul.f32 %v33_v8, %v31_v6  ;;  %v48_v18 = vmul.f32 %v47_v12, %v45_v7  ;;  %v133_v12 = vperm.slane %v22_v51, 7 }
  0x77   :  { %v35_v16 = vadd.f32 %v247_v9, %v34_v10  ;;  %v126_v10 = vperm.slane %v22_v51, 6 }
  0x7d   :  { %v38_v14 = vpop.permute.xlu0 %37  ;;  %v52_v15 = vpop.permute.xlu1 %51 }
  0x7e   :  { %v41_v17 = vmul.f32 %v40_v11, %v38_v14  ;;  %v55_v20 = vmul.f32 %v54_v13, %v52_v15 }
  0x80   :  { %v42_v19 = vadd.f32 %v41_v17, %v35_v16 }
  0x82   :  { %v49_v21 = vadd.f32 %v48_v18, %v42_v19  ;;  %v23_v18 = vld [vmem:[%s331_s3 + $0x8] sm:$0xff] }
  0x83   :  { %v140_v19 = vperm.slane %v23_v18, 0  ;;  %v147_v22 = vperm.slane %v23_v18, 1 }
  0x84   :  { %v56_v23 = vadd.f32 %v55_v20, %v49_v21 }
  0x86   :  { %v57_v24 = vsub.f32 0.0, %v56_v23 }
  0x88   :  { %v58_v25 = vmul.f32 1.442695, %v57_v24  ;;  %v154_v24 = vperm.slane %v23_v18, 2 }
  0x8a   :  { %249 = vpow2.f32 %v58_v25 }
  0x90   :  { %v250_v26 = vpop.eup %249 }
  0x91   :  { %v60_v27 = vadd.f32 1.0, %v250_v26 }
  0x93   :  { %251 = vrcp.f32 %v60_v27  ;;  %v72_v31 = vand.u32 2147483648, %v60_v27  ;;  %v70_v33 = vand.u32 2147483647, %v60_v27  ;;  %vm66_vm1 = vweird.f32 %v60_v27 }
  0x95   :  { %v73_v35 = vor.u32 1.1754944e-38, %v72_v31  ;;  %vm71_vm3 = vcmp.eq.f32.partialorder %v70_v33, 8.507059e+37  ;;  %v161_v31 = vperm.slane %v23_v18, 3 }
  0x99   :  { %v252_v28 = vpop.eup %251 }
  0x9a   :  { %v62_v29 = vmul.f32 %v252_v28, %v60_v27  ;;  %vm67_vm0 = vweird.f32 %v252_v28 }
  0x9b   :  { %vm68_vm2 = vmor %vm66_vm1, %vm67_vm0 }
  0x9c   :  { %v63_v30 = vsub.f32 1.0, %v62_v29 }
  0x9e   :  { %v64_v32 = vmul.f32 %v252_v28, %v63_v30 }
  0xa0   :  { %v65_v34 = vadd.f32 %v252_v28, %v64_v32 }
  0xa2   :  { %v69_v36 = vsel %vm68_vm2, %v252_v28, %v65_v34  ;;  %v168_v34 = vperm.slane %v23_v18, 4 }
  0xa3   :  { %v74_v37 = vsel %vm71_vm3, %v73_v35, %v69_v36  ;;  %v175_v36 = vperm.slane %v23_v18, 5 }
  0xa4   :  { %109 = vperm.xlu0 %234, %v74_v37   ;;  %95 = vperm.xlu1 %232, %v74_v37  }
  0xa5   :  { %81 = vperm.xlu2 %230, %v74_v37  }
  0xac   :  { %239 = vset.pattern.permute.xlu0 %v262_v38  ;;  %235 = vset.pattern.permute.xlu1 %v263_v39 }
  0xad   :  { %231 = vset.pattern.permute.xlu2 %v259_v3  ;;  %144 = vperm.xlu0 %239, %v74_v37   ;;  %v112_v3 = vperm.slane %v22_v51, 4 }
  0xae   :  { %116 = vperm.xlu1 %235, %v74_v37   ;;  %88 = vperm.xlu2 %231, %v74_v37  }
  0xb5   :  { %244 = vset.pattern.permute.xlu0 %v264_v40 }
  0xb6   :  { %237 = vset.pattern.permute.xlu1 %v265_v41  ;;  %233 = vset.pattern.permute.xlu2 %v260_v4  ;;  %v119_v4 = vperm.slane %v22_v51, 5 }
  0xb7   :  { %179 = vperm.xlu0 %244, %v74_v37   ;;  %130 = vperm.xlu1 %237, %v74_v37  }
  0xb8   :  { %102 = vperm.xlu2 %233, %v74_v37  }
  0xbf   :  { %240 = vset.pattern.permute.xlu1 %v266_v42  ;;  %246 = vset.pattern.permute.xlu0 %v267_v43  ;;  %v182_v42 = vperm.slane %v23_v18, 6 }
  0xc0   :  { %236 = vset.pattern.permute.xlu2 %v268_v44  ;;  %151 = vperm.xlu1 %240, %v74_v37  }
  0xc1   :  { %123 = vperm.xlu2 %236, %v74_v37  }
  0xc8   :  { %242 = vset.pattern.permute.xlu1 %v269_v45 }
  0xc9   :  { %238 = vset.pattern.permute.xlu2 %v270_v46  ;;  %165 = vperm.xlu1 %242, %v74_v37   ;;  %v189_v46 = vperm.slane %v23_v18, 7 }
  0xca   :  { %137 = vperm.xlu2 %238, %v74_v37  }
  0xd1   :  { %245 = vset.pattern.permute.xlu1 %v267_v43 }
  0xd2   :  { %241 = vset.pattern.permute.xlu2 %v271_v47  ;;  %186 = vperm.xlu1 %245, %v74_v37  }
  0xd3   :  { %158 = vperm.xlu2 %241, %v74_v37  }
  0xdb   :  { %243 = vset.pattern.permute.xlu2 %v272_v48 }
  0xdc   :  { %172 = vperm.xlu2 %243, %v74_v37  }
  0xff   :  { %v82_v49 = vpop.permute.xlu2 %81 }
 0x100   :  { %v85_v56 = vmul.f32 %v84_v52, %v82_v49 }
 0x102   :  { %v86_v60 = vadd.f32 %v248_v55, %v85_v56 }
 0x108   :  { %v89_v50 = vpop.permute.xlu2 %88 }
 0x109   :  { %v92_v59 = vmul.f32 %v91_v53, %v89_v50 }
 0x10b   :  { %v93_v62 = vadd.f32 %v92_v59, %v86_v60 }
 0x112   :  { %v103_v54 = vpop.permute.xlu2 %102 }
 0x113   :  { %v106_v2 = vmul.f32 %v105_v63, %v103_v54 }
 0x116   :  { %v96_v58 = vpop.permute.xlu1 %95  ;;  %v110_v6 = vpop.permute.xlu0 %109 }
 0x117   :  { %v99_v61 = vmul.f32 %v98_v57, %v96_v58  ;;  %v113_v8 = vmul.f32 %v112_v3, %v110_v6 }
 0x119   :  { %v100_v0 = vadd.f32 %v99_v61, %v93_v62 }
 0x11b   :  { %v124_v1 = vpop.permute.xlu2 %123  ;;  %v107_v7 = vadd.f32 %v106_v2, %v100_v0 }
 0x11c   :  { %v127_v16 = vmul.f32 %v126_v10, %v124_v1 }
 0x11d   :  { %v114_v11 = vadd.f32 %v113_v8, %v107_v7 }
 0x11f   :  { %v145_v25 = vpop.permute.xlu0 %144 }
 0x120   :  { %v117_v5 = vpop.permute.xlu1 %116  ;;  %v148_v29 = vmul.f32 %v147_v22, %v145_v25 }
 0x121   :  { %v120_v9 = vmul.f32 %v119_v4, %v117_v5 }
 0x123   :  { %v121_v13 = vadd.f32 %v120_v9, %v114_v11 }
 0x124   :  { %v138_v14 = vpop.permute.xlu2 %137 }
 0x125   :  { %v128_v20 = vadd.f32 %v127_v16, %v121_v13  ;;  %v141_v23 = vmul.f32 %v140_v19, %v138_v14 }
 0x129   :  { %v131_v15 = vpop.permute.xlu1 %130  ;;  %v180_v44 = vpop.permute.xlu0 %179 }
 0x12a   :  { %v134_v17 = vmul.f32 %v133_v12, %v131_v15  ;;  %v183_v47 = vmul.f32 %v182_v42, %v180_v44 }
 0x12c   :  { %v135_v21 = vadd.f32 %v134_v17, %v128_v20 }
 0x12d   :  { %v159_v27 = vpop.permute.xlu2 %158 }
 0x12e   :  { %v142_v26 = vadd.f32 %v141_v23, %v135_v21  ;;  %v162_v35 = vmul.f32 %v161_v31, %v159_v27 }
 0x130   :  { %v149_v32 = vadd.f32 %v148_v29, %v142_v26 }
 0x132   :  { %v152_v28 = vpop.permute.xlu1 %151 }
 0x133   :  { %v155_v30 = vmul.f32 %v154_v24, %v152_v28 }
 0x135   :  { %v156_v33 = vadd.f32 %v155_v30, %v149_v32 }
 0x136   :  { %v173_v38 = vpop.permute.xlu2 %172 }
 0x137   :  { %v163_v39 = vadd.f32 %v162_v35, %v156_v33  ;;  %v176_v43 = vmul.f32 %v175_v36, %v173_v38 }
 0x13b   :  { %v166_v37 = vpop.permute.xlu1 %165 }
 0x13c   :  { %v169_v40 = vmul.f32 %v168_v34, %v166_v37 }
 0x13e   :  { %v170_v41 = vadd.f32 %v169_v40, %v163_v39 }
 0x140   :  { %v177_v45 = vadd.f32 %v176_v43, %v170_v41 }
 0x142   :  { %v184_v50 = vadd.f32 %v183_v47, %v177_v45 }
 0x144   :  { %v187_v48 = vpop.permute.xlu1 %186 }
 0x145   :  { %v190_v49 = vmul.f32 %v189_v46, %v187_v48 }
 0x147   :  { %v191_v51 = vadd.f32 %v190_v49, %v184_v50 }
 0x149   :  { %v193_v52 = vsel %vm192_vm4, %v191_v51, -inf }
 0x14a   :  { %194 = vmax.xlane.f32.xlu2 %v193_v52 }
 0x1bd   :  { %v195_v53 = vpop.xlane.xlu2 %194 }
 0x1be   :  { %v196_v54 = vsub.f32 %v191_v51, %v195_v53 }
 0x1c0   :  { %v197_v55 = vmul.f32 1.442695, %v196_v54 }
 0x1c2   :  { %253 = vpow2.f32 %v197_v55 }
 0x1c8   :  { %v254_v56 = vpop.eup %253 }
 0x1c9   :  { %v199_v57 = vsel %vm192_vm4, %v254_v56, 0.0 }
 0x1ca   :  { %200 = vadd.xlane.f32.xlu1 %v199_v57 }
 0x23d   :  { %v201_v58 = vpop.xlane.xlu1 %200 }
 0x23e   :  { %255 = vlog2.f32 %v201_v58 }
 0x244   :  { %v256_v59 = vpop.eup %255 }
 0x245   :  { %v203_v60 = vmul.f32 0.6931472, %v256_v59 }
 0x247   :  { %v204_v61 = vsub.f32 %v196_v54, %v203_v60 }
 0x249   :  { %205 = vst.msk [vmem:[%s332_s5] sm:$0xff] %vm192_vm4, %v204_v61 }

</bundles_post_ra>
